<compile_context>
chip_gen: v7x
topology: tpu7x:2x2x1
jax: 0.10.0
libtpu: 0.0.40
codegen_flags: <defaults>
</compile_context>

<pallas_src>
import jax
import jax.numpy as jnp
from jax.experimental import pallas as pl
from jax.experimental.pallas import tpu as pltpu


def _round_up(x, m):
    return (x + m - 1) // m * m


def _make_fused_kernel(num_layers, num_heads, h_pad, compute_dtype):
    """Kernel: per spatial tile, run the fused per-pixel MLP with channels on
    sublanes and the spatial axis on the lanes (lane-dense loads AND stores).

    Ref order: x, w0, b0, [w_mid, b_mid]*(num_layers-2), w_last, b_last, out.
    Weights are compute_dtype (bf16); biases are f32; accumulation is f32.
    """

    def kernel(x_ref, *refs):
        out_ref = refs[-1]
        prefs = refs[:-1]

        h = x_ref[...]                                     # (Cin, tm) compute_dtype
        if h.dtype != compute_dtype:
            h = h.astype(compute_dtype)

        # Layer 0: every head reads the same input -> one row-concatenated matmul.
        acc = jnp.dot(prefs[0][...], h,
                      preferred_element_type=jnp.float32) + prefs[1][...]
        idx = 2

        # Middle layers: per-head weights kept separate (no block-diag zeros).
        for _ in range(num_layers - 2):
            acc = jnp.maximum(acc, 0.0).astype(compute_dtype)     # ReLU, then bf16
            wm = prefs[idx][...]                                  # (nh, Hp, Hp)
            bm = prefs[idx + 1][...]                              # (nh, Hp, 1)
            idx += 2
            parts = []
            for hd in range(num_heads):
                hi = acc[hd * h_pad:(hd + 1) * h_pad, :]
                parts.append(jnp.dot(wm[hd], hi,
                                     preferred_element_type=jnp.float32) + bm[hd])
            acc = jnp.concatenate(parts, axis=0)

        # Final conv (no ReLU after it).  num_layers == 1 means layer 0 was final.
        if num_layers >= 2:
            acc = jnp.maximum(acc, 0.0).astype(compute_dtype)
            acc = jnp.dot(prefs[idx][...], acc,
                          preferred_element_type=jnp.float32) + prefs[idx + 1][...]

        out_ref[...] = acc.astype(out_ref.dtype)

    return kernel


def _fuse_group(head_param_list, compute_dtype):
    """Pack per-head 1x1-conv chains (same depth) for the fused kernel.

    Per-head weights are stored conv-style as (Cout, Cin); biases as (Cout,).
    Returns (packed_operands, num_heads, h_pad, c_total); packed order matches
    the kernel: w0, b0, [w_mid, b_mid]*, w_last, b_last.
    """
    num_layers = len(head_param_list[0]["weights"])
    cin = head_param_list[0]["weights"][0].shape[1]
    for p in head_param_list:
        assert len(p["weights"]) == num_layers
        assert p["weights"][0].shape[1] == cin, \
            "heads in a depth group must share the input channel count"

    num_heads = len(head_param_list)
    sub = 8 if jnp.dtype(compute_dtype).itemsize >= 4 else 16   # sublane granularity

    packed = []

    if num_layers == 1:
        w = jnp.concatenate([p["weights"][0] for p in head_param_list], axis=0)
        b = jnp.concatenate([p["biases"][0] for p in head_param_list], axis=0)[:, None]
        packed += [w.astype(compute_dtype), b.astype(jnp.float32)]
        return packed, num_heads, 0, int(w.shape[0])

    hidden = head_param_list[0]["weights"][0].shape[0]
    for p in head_param_list:
        assert p["weights"][0].shape[0] == hidden, \
            "heads in a depth group must share head_conv"
    h_pad = _round_up(hidden, sub)
    pad = h_pad - hidden

    # Layer 0: per-head rows padded to h_pad, row-concatenated (shared input).
    w0 = jnp.concatenate(
        [jnp.pad(p["weights"][0], ((0, pad), (0, 0))) for p in head_param_list], axis=0)
    b0 = jnp.concatenate(
        [jnp.pad(p["biases"][0], (0, pad)) for p in head_param_list], axis=0)[:, None]
    packed += [w0.astype(compute_dtype), b0.astype(jnp.float32)]

    # Middle layers: stacked per-head (num_heads, h_pad, h_pad) -- no zero flops.
    for l in range(1, num_layers - 1):
        wm = jnp.stack(
            [jnp.pad(p["weights"][l], ((0, pad), (0, pad))) for p in head_param_list], axis=0)
        bm = jnp.stack(
            [jnp.pad(p["biases"][l], (0, pad)) for p in head_param_list], axis=0)[:, :, None]
        packed += [wm.astype(compute_dtype), bm.astype(jnp.float32)]

    # Final layer: per-head (classes, hidden), contraction axis padded, block-diag
    # (tiny: c_total rows total, so the zeros are negligible).
    wl = jax.scipy.linalg.block_diag(
        *[jnp.pad(p["weights"][-1], ((0, 0), (0, pad))) for p in head_param_list])
    bl = jnp.concatenate([p["biases"][-1] for p in head_param_list], axis=0)[:, None]
    packed += [wl.astype(compute_dtype), bl.astype(jnp.float32)]

    return packed, num_heads, h_pad, int(wl.shape[0])


def _run_fused(x3d, packed, num_layers, num_heads, h_pad, c_total, *,
               tm, compute_dtype):
    """Run the fused head-group MLP on x3d of shape (B, Cin, S).

    Returns (B, c_total, S) float32 (channels-first, so reshaping back to NCHW
    is free).  No host-side spatial padding: the last spatial tile is ragged and
    handled by Pallas' masked block writeback.
    """
    B, cin, S = x3d.shape

    tm = max(128, _round_up(tm, 128))
    tm_eff = min(tm, _round_up(S, 128))
    # v7x: keep enough grid steps so both TensorCores and the pipeline get work.
    MIN_STEPS = 8
    while tm_eff > 128 and B * pl.cdiv(S, tm_eff) < MIN_STEPS:
        tm_eff = max(128, _round_up(tm_eff // 2, 128))
    grid = (B, pl.cdiv(S, tm_eff))

    in_specs = [pl.BlockSpec((None, cin, tm_eff), lambda b, s: (b, 0, s))]
    for arr in packed:
        # Whole-array blocks with a constant index map -> fetched once.
        in_specs.append(pl.BlockSpec(arr.shape, lambda b, s, _nd=arr.ndim: (0,) * _nd))
        # NOTE: these constant blocks are tiny, so default double-buffering costs
        # negligible VMEM; pl.Buffered(1) intentionally not used to keep the
        # lowering simple.

    # Explicit VMEM budget: x / out double buffers + f32 accumulator + bf16 copy
    # of the hidden activation + (double-buffered) weights, with 2x headroom.
    cbytes = jnp.dtype(compute_dtype).itemsize
    m_rows = max(num_heads * h_pad, c_total, cin)
    budget = (2 * cin * tm_eff * cbytes
              + 2 * c_total * tm_eff * 4
              + 2 * m_rows * tm_eff * (4 + cbytes)
              + 2 * sum(a.size * a.dtype.itemsize for a in packed))
    vmem_limit = int(min(64 << 20, max(2 * budget, 16 << 20)))

    kernel = _make_fused_kernel(num_layers, num_heads, h_pad, compute_dtype)

    return pl.pallas_call(
        kernel,
        out_shape=jax.ShapeDtypeStruct((B, c_total, S), jnp.float32),
        grid_spec=pltpu.PrefetchScalarGridSpec(
            num_scalar_prefetch=0,
            grid=grid,
            in_specs=in_specs,
            out_specs=pl.BlockSpec((None, c_total, tm_eff), lambda b, s: (b, 0, s)),
        ),
        compiler_params=pltpu.CompilerParams(
            dimension_semantics=("parallel", "parallel"),
            vmem_limit_bytes=vmem_limit,
        ),
    )(x3d, *packed)


def init_sep_head_params(key, in_channels, heads, head_conv=64, init_bias=-2.19):
    """Deterministic synthetic parameter init mirroring SepHead.__init__ shapes.

    Per head with (classes, num_conv):
      weights[i]: (Cout_i, Cin_i)  -- 1x1 conv weight (squeezed kernel dims)
      biases[i] : (Cout_i,)
    Heads whose name contains 'hm'/'iou' get their final bias filled with
    init_bias; weights use kaiming-normal (fan_out, relu).
    """
    params = {}
    for head, (classes, num_conv) in heads.items():
        dims = []
        cin = in_channels
        for _ in range(num_conv - 1):
            dims.append((head_conv, cin))
            cin = head_conv
        dims.append((classes, cin))

        ws, bs = [], []
        for (co, ci) in dims:
            key, wk = jax.random.split(key)
            std = (2.0 / co) ** 0.5  # kaiming_normal_(mode='fan_out', relu), 1x1 conv
            ws.append(std * jax.random.normal(wk, (co, ci), dtype=jnp.float32))
            bs.append(jnp.zeros((co,), dtype=jnp.float32))

        if ("hm" in head) or ("iou" in head):
            bs[-1] = jnp.full((dims[-1][0],), init_bias, dtype=jnp.float32)

        params[head] = {"weights": ws, "biases": bs}
    return params, key


def sep_head_forward(x_nchw, params, *, tm=2048, compute_dtype=jnp.bfloat16):
    """SepHead.forward: returns dict head -> NCHW tensor (B, classes, H, W)."""
    B, C, H, W = x_nchw.shape
    S = H * W
    # Free reshape (stays channels-first); single cast to the MXU-native dtype is
    # the only extra pass over x, and halves its HBM read bytes.
    x3d = x_nchw.reshape(B, C, S).astype(compute_dtype)

    # Group heads that share the same depth so each group fuses into one kernel.
    groups = {}
    for head, p in params.items():
        groups.setdefault(len(p["weights"]), []).append(head)

    ret = {}
    for head_names in groups.values():
        plist = [params[h] for h in head_names]
        class_sizes = [p["weights"][-1].shape[0] for p in plist]
        num_layers = len(plist[0]["weights"])
        packed, num_heads, h_pad, c_total = _fuse_group(plist, compute_dtype)
        out3d = _run_fused(x3d, packed, num_layers, num_heads, h_pad, c_total,
                           tm=tm, compute_dtype=compute_dtype)   # (B, c_total, S)
        out4d = out3d.reshape(B, c_total, H, W)                  # free reshape
        off = 0
        for head, cs in zip(head_names, class_sizes):
            ret[head] = out4d[:, off:off + cs, :, :]
            off += cs

    # Preserve the original head ordering of the module's dict.
    return {head: ret[head] for head in params}


def _reference_forward(x_nchw, params, compute_dtype=None):
    """Pure-JAX reference.  With compute_dtype=None: full f32 module semantics.
    With compute_dtype=bf16: emulates the kernel's operand precision exactly
    (bf16 operands, f32 accumulation / bias / ReLU)."""
    def q(a):
        if compute_dtype is None:
            return a
        return a.astype(compute_dtype).astype(jnp.float32)

    ret = {}
    for head, p in params.items():
        h = q(x_nchw)
        n = len(p["weights"])
        for i, (w, b) in enumerate(zip(p["weights"], p["biases"])):
            h = jnp.einsum("oc,bchw->bohw", q(w), h,
                           precision=jax.lax.Precision.HIGHEST)
            h = h + b[None, :, None, None]
            if i < n - 1:
                h = q(jnp.maximum(h, 0.0))
        ret[head] = h
    return ret


if __name__ == "__main__":
    key = jax.random.PRNGKey(0)

    # Small, CenterPoint-like configuration.  W=18 makes S=288 so the last
    # spatial tile is ragged, exercising the masked writeback path.
    B, C, H, W = 2, 4, 16, 18
    head_conv = 32
    heads = {
        "hm": (2, 2),      # heatmap head: final bias filled with -2.19
        "reg": (2, 2),
        "height": (1, 2),
        "dim": (3, 2),
        "rot": (2, 2),
        "vel": (2, 3),     # depth-3 group exercises per-head middle layers
        "iou": (1, 3),
    }

    params, key = init_sep_head_params(key, C, heads, head_conv=head_conv)

    key, xk = jax.random.split(key)
    x = jax.random.normal(xk, (B, C, H, W), dtype=jnp.float32)

    out = sep_head_forward(x, params, tm=2048, compute_dtype=jnp.bfloat16)
    out = jax.tree_util.tree_map(jax.block_until_ready, out)

    # 1) Structural correctness: match a reference that emulates the kernel's
    #    bf16-operand / f32-accumulation precision (tight tolerance).
    ref_bf16 = _reference_forward(x, params, compute_dtype=jnp.bfloat16)
    # 2) Module semantics: match the full-f32 reference within bf16 accuracy.
    ref_f32 = _reference_forward(x, params)

    for head, (classes, _) in heads.items():
        assert out[head].shape == (B, classes, H, W), (head, out[head].shape)
        assert jnp.allclose(out[head], ref_bf16[head], atol=5e-3, rtol=5e-3), head
        assert jnp.allclose(out[head], ref_f32[head], atol=2.5e-1, rtol=1e-1), head

    print("KERNEL_OK")
</pallas_src>

<mosaic_0001>
module attributes {stable_mosaic.version = 11 : i64} {
  func.func @kernel(%arg0: i32, %arg1: i32, %arg2: memref<1x4x128xbf16, #tpu.memory_space<vmem>>, %arg3: memref<160x4xbf16, #tpu.memory_space<vmem>>, %arg4: memref<160x1xf32, #tpu.memory_space<vmem>>, %arg5: memref<10x160xbf16, #tpu.memory_space<vmem>>, %arg6: memref<10x1xf32, #tpu.memory_space<vmem>>, %arg7: memref<1x10x128xf32, #tpu.memory_space<vmem>>) attributes {dimension_semantics = [#tpu.dimension_semantics<parallel>, #tpu.dimension_semantics<parallel>], iteration_bounds = array<i64: 2, 3>, scalar_prefetch = 0 : i64, scratch_operands = 0 : i64, tpu.core_type = #tpu.core_type<tc>, window_params = [{transform_indices = @transform_0, window_bounds = array<i64: 1, 4, 128>}, {pipeline_mode = #tpu.pipeline_mode<synchronous>, transform_indices = @transform_1, window_bounds = array<i64: 160, 4>}, {pipeline_mode = #tpu.pipeline_mode<synchronous>, transform_indices = @transform_2, window_bounds = array<i64: 160, 1>}, {pipeline_mode = #tpu.pipeline_mode<synchronous>, transform_indices = @transform_3, window_bounds = array<i64: 10, 160>}, {pipeline_mode = #tpu.pipeline_mode<synchronous>, transform_indices = @transform_4, window_bounds = array<i64: 10, 1>}, {transform_indices = @transform_5, window_bounds = array<i64: 1, 10, 128>}]} {
    %c0 = arith.constant 0 : index
    %c0_0 = arith.constant 0 : index
    %c0_1 = arith.constant 0 : index
    %0 = vector.load %arg2[%c0, %c0_0, %c0_1] : memref<1x4x128xbf16, #tpu.memory_space<vmem>>, vector<1x4x128xbf16>
    %1 = vector.shape_cast %0 : vector<1x4x128xbf16> to vector<4x128xbf16>
    %c0_2 = arith.constant 0 : index
    %c0_3 = arith.constant 0 : index
    %2 = vector.load %arg3[%c0_2, %c0_3] : memref<160x4xbf16, #tpu.memory_space<vmem>>, vector<160x4xbf16>
    %cst = arith.constant dense<0.000000e+00> : vector<160x128xf32>
    %3 = tpu.matmul %2, %1, %cst {dimension_numbers = #tpu.dot_dimension_numbers<[1], [0], [0], [1], [0, 0, 1, 1], [], []>} : vector<160x4xbf16>, vector<4x128xbf16>, vector<160x128xf32> -> vector<160x128xf32>
    %c0_4 = arith.constant 0 : index
    %c0_5 = arith.constant 0 : index
    %4 = vector.load %arg4[%c0_4, %c0_5] : memref<160x1xf32, #tpu.memory_space<vmem>>, vector<160x1xf32>
    %5 = vector.broadcast %4 : vector<160x1xf32> to vector<160x128xf32>
    %6 = arith.addf %3, %5 : vector<160x128xf32>
    %cst_6 = arith.constant 0.000000e+00 : f32
    %7 = vector.broadcast %cst_6 : f32 to vector<160x128xf32>
    %8 = arith.maximumf %6, %7 : vector<160x128xf32>
    %9 = arith.truncf %8 : vector<160x128xf32> to vector<160x128xbf16>
    %c0_7 = arith.constant 0 : index
    %c0_8 = arith.constant 0 : index
    %10 = vector.load %arg5[%c0_7, %c0_8] : memref<10x160xbf16, #tpu.memory_space<vmem>>, vector<10x160xbf16>
    %cst_9 = arith.constant dense<0.000000e+00> : vector<10x128xf32>
    %11 = tpu.matmul %10, %9, %cst_9 {dimension_numbers = #tpu.dot_dimension_numbers<[1], [0], [0], [1], [0, 0, 1, 1], [], []>} : vector<10x160xbf16>, vector<160x128xbf16>, vector<10x128xf32> -> vector<10x128xf32>
    %c0_10 = arith.constant 0 : index
    %c0_11 = arith.constant 0 : index
    %12 = vector.load %arg6[%c0_10, %c0_11] : memref<10x1xf32, #tpu.memory_space<vmem>>, vector<10x1xf32>
    %13 = vector.broadcast %12 : vector<10x1xf32> to vector<10x128xf32>
    %14 = arith.addf %11, %13 : vector<10x128xf32>
    %c0_12 = arith.constant 0 : index
    %c0_13 = arith.constant 0 : index
    %c0_14 = arith.constant 0 : index
    %15 = vector.load %arg7[%c0_12, %c0_13, %c0_14] : memref<1x10x128xf32, #tpu.memory_space<vmem>>, vector<1x10x128xf32>
    %16 = vector.shape_cast %15 : vector<1x10x128xf32> to vector<10x128xf32>
    %17 = vector.shape_cast %14 : vector<10x128xf32> to vector<1x10x128xf32>
    tpu.vector_store %arg7[%c0_12, %c0_13, %c0_14], %17 {strides = array<i32>} : memref<1x10x128xf32, #tpu.memory_space<vmem>>, vector<1x10x128xf32>,
    return
  }
  func.func @transform_0(%arg0: i32, %arg1: i32) -> (i32, i32, i32) {
    %c0_i32 = arith.constant 0 : i32
    %c0_i32_0 = arith.constant 0 : i32
    return %arg0, %c0_i32, %arg1 : i32, i32, i32
  }
  func.func @transform_1(%arg0: i32, %arg1: i32) -> (i32, i32) {
    %c0_i32 = arith.constant 0 : i32
    %c0_i32_0 = arith.constant 0 : i32
    %c0_i32_1 = arith.constant 0 : i32
    return %c0_i32, %c0_i32_0 : i32, i32
  }
  func.func @transform_2(%arg0: i32, %arg1: i32) -> (i32, i32) {
    %c0_i32 = arith.constant 0 : i32
    %c0_i32_0 = arith.constant 0 : i32
    %c0_i32_1 = arith.constant 0 : i32
    return %c0_i32, %c0_i32_0 : i32, i32
  }
  func.func @transform_3(%arg0: i32, %arg1: i32) -> (i32, i32) {
    %c0_i32 = arith.constant 0 : i32
    %c0_i32_0 = arith.constant 0 : i32
    %c0_i32_1 = arith.constant 0 : i32
    return %c0_i32, %c0_i32_0 : i32, i32
  }
  func.func @transform_4(%arg0: i32, %arg1: i32) -> (i32, i32) {
    %c0_i32 = arith.constant 0 : i32
    %c0_i32_0 = arith.constant 0 : i32
    %c0_i32_1 = arith.constant 0 : i32
    return %c0_i32, %c0_i32_0 : i32, i32
  }
  func.func @transform_5(%arg0: i32, %arg1: i32) -> (i32, i32, i32) {
    %c0_i32 = arith.constant 0 : i32
    %c0_i32_0 = arith.constant 0 : i32
    return %arg0, %c0_i32, %arg1 : i32, i32, i32
  }
}

</mosaic_0001>

<bundles_post_ra>
// kernel: tpu_custom_call.1
= control target key start
LH: loop header
LB: loop body
LE: loop exit
PB: predicated region body
PF: predicated region fallthrough
CT: control target
= control target key end

     0   :  { %s1030_s18 = smov 0   ;;  %s1032_s19 = smov 0   ;;  %s1249_s0 = inlined_call_operand.vmem [shape: bf16[2,4,288], index: 0, kind: input, shape index: {}]   ;;  %s1250_s1 = inlined_call_operand.vmem [shape: bf16[160,4], index: 1, kind: input, shape index: {}]   ;;  %s1251_s2 = inlined_call_operand.vmem [shape: f32[160,1], index: 2, kind: input, shape index: {}]   ;;  %s1252_s3 = inlined_call_operand.vmem [shape: bf16[10,160], index: 3, kind: input, shape index: {}]   ;;  %s1253_s4 = inlined_call_operand.vmem [shape: f32[10,1], index: 4, kind: input, shape index: {}]   ;;  %s1254_s5 = inlined_call_operand.vmem [shape: f32[2,10,288], index: 5, kind: output, shape index: {}]  }
   0x1   :  { %s1034_s20 = smov 0   ;;  %s1036_s21 = smov 0  }
   0x2   :  { %s1038_s22 = smov 0   ;;  %s1040_s23 = smov 0  }
   0x3   :  { %s1042_s24 = smov 0  }
   0x4 LB: > { %s24_s25 = sadd.s32 1, %s989_s22  ;;  %s27_s26 = sadd.s32 1, %s993_s23  ;;  %s997_s24 = sphi %s1042_s24, %s15_s24   ;;  %s993_s23 = sphi %s1040_s23, %s1261_s23   ;;  %s989_s22 = sphi %s1038_s22, %s1260_s22   ;;  %s985_s21 = sphi %s1036_s21, %s1259_s21   ;;  %s981_s20 = sphi %s1034_s20, %s1258_s20   ;;  %s977_s19 = sphi %s1032_s19, %s1257_s19   ;;  %s973_s18 = sphi %s1030_s18, %s1256_s18  }
   0x5   : > { %p25_p0 = scmp.ge.s32.totalorder %s24_s25, 3  ;;  %s801_s27 = sadd.s32 4294967295, %s997_s24  }
   0x6   : > { %p158_p1 = scmp.ne.s32.totalorder %s977_s19, %s973_s18  ;;  %p159_p2 = scmp.eq.s32.totalorder %s801_s27, 5 }
   0x7   : > { %s1263_s25 = smov (%p25_p0, %s24_s25), 0  ;;  %s1265_s26 = smov (!%p25_p0, %s27_s26), %s993_s23 }
   0x8   : > { %s144_s28 = ssub.s32 %s989_s22, %s1263_s25  ;;  %p29_p3 = scmp.ge.s32.totalorder %s1265_s26, 2 }
   0x9   : > { %p805_p4 = scmp.ge.s32.totalorder %s997_s24, 1  ;;  %p1076_p5 = por %p159_p2, %p158_p1 }
   0xa   : > { %p206_p6 = scmp.lt.s32.totalorder %s997_s24, 7  ;;  %s1267_s26 = smov (%p29_p3, %s1265_s26), 0 }
   0xb   : > { %s143_s30 = ssub.s32 %s993_s23, %s1267_s26  ;;  %s148_s7 = sadd.s32 1, %s977_s19 }
   0xc   : > { %p207_p7 = pnand %p805_p4, %p206_p6  ;;  %s145_s6 = sor.u32 %s144_s28, %s143_s30 }
   0xd   : > { %p146_p8 = scmp.eq.s32.totalorder %s145_s6, 0  ;;  %p236_p9 = scmp.lt.s32.totalorder (!%p207_p7), %s985_s21, 1  ;;  %v930_v0 = vld [vmem:[%s1250_s1] sm:$0xff] (!%p207_p7)   ;;  %vm436_vm0 = vcmask (!%p207_p7), 31744   ;;  %vm467_vm1 = vcmask (!%p207_p7), 1041408   ;;  %v999_v1 = vmov (!%p207_p7), 0  }
   0xe   : > { %210 = sbr.rel (%p207_p7) target bundleno = 518 (0x206), region = 40  ;;  %p238_p10 = scmp.lt.s32.totalorder (!%p207_p7), %s981_s20, 2  ;;  %848 = vmatprep.mubr.msk.bf16.mxu0 (!%p207_p7), %vm436_vm0, %v930_v0  ;;  %928 = vset.pattern.permute.xlu0 (!%p207_p7), %v999_v1  ;;  %v931_v4 = vld [vmem:[%s1250_s1 + $0x8] sm:$0xff] (!%p207_p7)   ;;  %v266_v5 = vld [vmem:[%s1251_s2] sm:$0xff] (!%p207_p7)  ;;  %v932_v6 = vld [vmem:[%s1250_s1 + $0x10] sm:$0xff] (!%p207_p7)   ;;  %vm637_vm2 = vcmask (!%p207_p7), 261120  }
   0xf   : > { %s1087_s8 = scalar_select %p146_p8, %s977_s19, %s148_s7  }
  0x10   : > { %929 = vset.pattern.permute.xlu1 (!%p207_p7), %v999_v1  ;;  %641 = vmatprep.subr.bf16.mxu1 (!%p207_p7), %v999_v1  ;;  %v268_v7 = vld [vmem:[%s1251_s2 + $0x10] sm:$0xff] (!%p207_p7)  ;;  %v267_v8 = vld [vmem:[%s1251_s2 + $0x8] sm:$0xff] (!%p207_p7)  ;;  %v269_v9 = vld [vmem:[%s1251_s2 + $0x18] sm:$0xff] (!%p207_p7) }
  0x11   : > { %288 = vperm.xlu0 (!%p207_p7), %928, %v266_v5   ;;  %298 = vperm.xlu1 (!%p207_p7), %929, %v268_v7   ;;  %v270_v10 = vld [vmem:[%s1251_s2 + $0x20] sm:$0xff] (!%p207_p7)  ;;  %v271_v11 = vld [vmem:[%s1251_s2 + $0x28] sm:$0xff] (!%p207_p7)  ;;  %v933_v12 = vld [vmem:[%s1250_s1 + $0x18] sm:$0xff] (!%p207_p7)  }
  0x12   : > { %v934_v13 = vld [vmem:[%s1250_s1 + $0x20] sm:$0xff] (!%p207_p7)   ;;  %v272_v14 = vld [vmem:[%s1251_s2 + $0x30] sm:$0xff] (!%p207_p7)  ;;  %v273_v15 = vld [vmem:[%s1251_s2 + $0x38] sm:$0xff] (!%p207_p7) }
  0x13   : > { %v274_v16 = vld [vmem:[%s1251_s2 + $0x40] sm:$0xff] (!%p207_p7)  ;;  %v275_v17 = vld [vmem:[%s1251_s2 + $0x48] sm:$0xff] (!%p207_p7)  ;;  %v936_v19 = vld [vmem:[%s1250_s1 + $0x30] sm:$0xff] (!%p207_p7)  }
  0x14   : > { %v935_v18 = vld [vmem:[%s1250_s1 + $0x28] sm:$0xff] (!%p207_p7)   ;;  %v276_v20 = vld [vmem:[%s1251_s2 + $0x50] sm:$0xff] (!%p207_p7)  ;;  %v277_v21 = vld [vmem:[%s1251_s2 + $0x58] sm:$0xff] (!%p207_p7) }
  0x15   : > { %s237_s11 = scalar_select %p236_p9, %s985_s21, 1  ;;  %293 = vperm.xlu0 %928, %v267_v8   ;;  %303 = vperm.xlu1 %929, %v269_v9   ;;  %v278_v22 = vld [vmem:[%s1251_s2 + $0x60] sm:$0xff]  ;;  %v279_v23 = vld [vmem:[%s1251_s2 + $0x68] sm:$0xff]  ;;  %v937_v24 = vld [vmem:[%s1250_s1 + $0x38] sm:$0xff]  }
  0x16   : > { %s239_s12 = scalar_select %p238_p10, %s981_s20, 2  ;;  %v938_v25 = vld [vmem:[%s1250_s1 + $0x40] sm:$0xff]   ;;  %v280_v26 = vld [vmem:[%s1251_s2 + $0x70] sm:$0xff]  ;;  %v281_v27 = vld [vmem:[%s1251_s2 + $0x78] sm:$0xff] }
  0x17   : > { %s869_s13 = smul.u32 3, %s237_s11  ;;  %v282_v28 = vld [vmem:[%s1251_s2 + $0x80] sm:$0xff]  ;;  %v283_v29 = vld [vmem:[%s1251_s2 + $0x88] sm:$0xff]  ;;  %v284_v31 = vld [vmem:[%s1251_s2 + $0x90] sm:$0xff] }
  0x18   : > { %v939_v30 = vld [vmem:[%s1250_s1 + $0x48] sm:$0xff]   ;;  %v285_v32 = vld [vmem:[%s1251_s2 + $0x98] sm:$0xff]  ;;  %v616_v33 = vld [vmem:[%s1253_s4] sm:$0xff] }
  0x19   : > { %s241_s14 = sadd.s32 %s869_s13, %s239_s12  ;;  %308 = vperm.xlu0 %928, %v270_v10   ;;  %313 = vperm.xlu1 %929, %v271_v11   ;;  %v617_v34 = vld [vmem:[%s1253_s4 + $0x8] sm:$0x3]  ;;  %v942_v35 = vld [vmem:[%s1252_s3 + $0x4] ss:$8 sps:$4 sm:$0x1f]  }
  0x1a   : > { %s807_s15 = sshll.u32 %s241_s14, 1  ;;  %830 = vmatprep.mubr.msk.bf16.mxu1 %vm637_vm2, %v942_v35 }
  0x1b   : > { %s243_s27 = scalar_lea.vmem %s1249_s0, %s807_s15  ;;  %s233_s15 = sand.u32 1, %s973_s18  }
  0x1c   : > { %v245_v2 = vld [vmem:[%s243_s27] sm:$0x3]  ;;  %s806_s16 = sshll.u32 %s233_s15, 4  ;;  %s870_s27 = smul.u32 (%p1076_p5), 6, %s985_s21 }
  0x1d   : > { %868 = vmatprep.subr.msk.bf16.mxu0 %vm467_vm1, %v245_v2  ;;  %v469_v3 = vsel %vm467_vm1, %v245_v2, 0  ;;  %318 = vperm.xlu0 %928, %v272_v14   ;;  %s235_s17 = scalar_lea.vmem [#allocation2], %s806_s16 }
  0x1e   : > { %847 = vmatpush3.bf16.msra.mxu0 %v469_v3  ;;  %323 = vperm.xlu1 %929, %v273_v15   ;;  %s692_s28 = sadd.s32 (%p1076_p5), %s981_s20, %s870_s27 }
  0x1f   : > { %s832_s18 = sshll.u32 (%p1076_p5), %s692_s28, 3 }
  0x20   : > { %s694_s7 = scalar_lea.vmem (%p1076_p5), %s1254_s5, %s832_s18 }
  0x21   : > { %849 = vmatmul.mubr.msk.bf16.vlgmr.msra.gmra.mrb[0].mxu0 %vm436_vm0, %v931_v4  ;;  %328 = vperm.xlu0 %928, %v274_v16  }
  0x22   : > { %852 = vmatprep.mubr.msk.bf16.mxu0 %vm436_vm0, %v932_v6  ;;  %333 = vperm.xlu1 %929, %v275_v17  }
  0x25   : > { %338 = vperm.xlu0 %928, %v276_v20  }
  0x26   : > { %343 = vperm.xlu1 %929, %v277_v21  }
  0x29   : > { %853 = vmatmul.mubr.msk.bf16.gmra.mrb[4].mxu0 %vm436_vm0, %v933_v12  ;;  %348 = vperm.xlu0 %928, %v278_v22  }
  0x2a   : > { %856 = vmatprep.mubr.msk.bf16.mxu0 %vm436_vm0, %v934_v13  ;;  %353 = vperm.xlu1 %929, %v279_v23  }
  0x2d   : > { %358 = vperm.xlu0 %928, %v280_v26  }
  0x2e   : > { %363 = vperm.xlu1 %929, %v281_v27  }
  0x31   : > { %857 = vmatmul.mubr.msk.bf16.gmra.mrb[8].mxu0 %vm436_vm0, %v935_v18  ;;  %368 = vperm.xlu0 %928, %v282_v28  }
  0x32   : > { %860 = vmatprep.mubr.msk.bf16.mxu0 %vm436_vm0, %v936_v19  ;;  %373 = vperm.xlu1 %929, %v283_v29  }
  0x35   : > { %378 = vperm.xlu0 %928, %v284_v31  }
  0x36   : > { %383 = vperm.xlu1 %929, %v285_v32  }
  0x39   : > { %861 = vmatmul.mubr.msk.bf16.gmra.mrb[12].mxu0 %vm436_vm0, %v937_v24  ;;  %620 = vperm.xlu0 %928, %v616_v33  }
  0x3a   : > { %864 = vmatprep.mubr.msk.bf16.mxu0 %vm436_vm0, %v938_v25  ;;  %625 = vperm.xlu1 %929, %v617_v34  }
  0x41   : > { %865 = vmatmul.mubr.msk.bf16.gmra.mrb[16].mxu0 %vm436_vm0, %v939_v30 }
  0x90   : > { %v289_v36 = vpop.permute.xlu0 %288  ;;  %v299_v37 = vpop.permute.xlu1 %298 }
  0x94   : > { %v294_v38 = vpop.permute.xlu0 %293  ;;  %v304_v39 = vpop.permute.xlu1 %303 }
  0x98   : > { %v309_v40 = vpop.permute.xlu0 %308  ;;  %v314_v41 = vpop.permute.xlu1 %313 }
  0x9c   : > { %v319_v42 = vpop.permute.xlu0 %318 }
  0x9d   : > { %v324_v43 = vpop.permute.xlu1 %323 }
  0xa0   : > { %v329_v47 = vpop.permute.xlu0 %328 }
  0xa1   : > { %v334_v52 = vpop.permute.xlu1 %333 }
  0xa4   : > { %v339_v59 = vpop.permute.xlu0 %338 }
  0xa5   : > { %v344_v0 = vpop.permute.xlu1 %343 }
  0xa8   : > { %v349_v9 = vpop.permute.xlu0 %348 }
  0xa9   : > { %v354_v13 = vpop.permute.xlu1 %353 }
  0xac   : > { %v359_v22 = vpop.permute.xlu0 %358 }
  0xad   : > { %v364_v26 = vpop.permute.xlu1 %363 }
  0xb0   : > { %v369_v34 = vpop.permute.xlu0 %368 }
  0xf4   : > { %v850_v44 = vpop.f32.mrb[0].mxu0 }
  0xf5   : > { %v514_v45 = vadd.f32 %v850_v44, %v299_v37  ;;  %v505_v46 = vpop.f32.mrb[1].mxu0 }
  0xf6   : > { %v506_v48 = vadd.f32 %v505_v46, %v289_v36  ;;  %v851_v49 = vpop.f32.mrb[2].mxu0  ;;  %v379_v46 = vpop.permute.xlu0 %378 }
  0xf7   : > { %v517_v50 = vadd.f32 %v851_v49, %v304_v39  ;;  %v508_v51 = vpop.f32.mrb[3].mxu0  ;;  %v586_v54 = vmax.f32 %v514_v45, 0.0  ;;  %v374_v39 = vpop.permute.xlu1 %373 }
  0xf8   : > { %v509_v53 = vadd.f32 %v508_v51, %v294_v38  ;;  %v584_v56 = vmax.f32 %v506_v48, 0.0 }
  0xf9   : > { %v587_v55 = vmax.f32 %v517_v50, 0.0 }
  0xfa   : > { %v585_v57 = vmax.f32 %v509_v53, 0.0 }
  0xfb   : > { %v605_v58 = vpack.c.bf16 %v587_v55, %v586_v54  ;;  %v384_v51 = vpop.permute.xlu1 %383 }
  0xfc   : > { %v854_v60 = vpop.f32.mrb[4].mxu0  ;;  %v604_v61 = vpack.c.bf16 %v585_v57, %v584_v56 }
  0xfd   : > { %v530_v62 = vadd.f32 %v854_v60, %v319_v42  ;;  %v521_v63 = vpop.f32.mrb[5].mxu0 }
  0xfe   : > { %v522_v2 = vadd.f32 %v521_v63, %v309_v40  ;;  %v855_v3 = vpop.f32.mrb[6].mxu0  ;;  %642 = vmatpush1.bf16.msra.mxu1 %v604_v61  ;;  %v940_v63 = vld [vmem:[%s1252_s3] ss:$8 sps:$4 sm:$0x1f]  }
  0xff   : > { %v533_v4 = vadd.f32 %v855_v3, %v324_v43  ;;  %v524_v5 = vpop.f32.mrb[7].mxu0  ;;  %643 = vmatprep.subr.bf16.mxu1 %v999_v1  ;;  %v590_v7 = vmax.f32 %v530_v62, 0.0 }
 0x100   : > { %v525_v6 = vadd.f32 %v524_v5, %v314_v41  ;;  %v588_v10 = vmax.f32 %v522_v2, 0.0  ;;  %v626_v5 = vpop.permute.xlu1 %625 }
 0x101   : > { %v591_v8 = vmax.f32 %v533_v4, 0.0 }
 0x102   : > { %v589_v11 = vmax.f32 %v525_v6, 0.0  ;;  %644 = vmatpush1.bf16.msra.mxu1 %v605_v58 }
 0x103   : > { %v607_v12 = vpack.c.bf16 %v591_v8, %v590_v7  ;;  %645 = vmatprep.subr.bf16.mxu1 %v999_v1 }
 0x104   : > { %v606_v14 = vpack.c.bf16 %v589_v11, %v588_v10  ;;  %v858_v15 = vpop.f32.mrb[8].mxu0 }
 0x105   : > { %v546_v16 = vadd.f32 %v858_v15, %v339_v59  ;;  %v537_v17 = vpop.f32.mrb[9].mxu0 }
 0x106   : > { %v538_v18 = vadd.f32 %v537_v17, %v329_v47  ;;  %v859_v19 = vpop.f32.mrb[10].mxu0  ;;  %646 = vmatpush1.bf16.msra.mxu1 %v606_v14 }
 0x107   : > { %v549_v20 = vadd.f32 %v859_v19, %v344_v0  ;;  %v540_v21 = vpop.f32.mrb[11].mxu0  ;;  %647 = vmatprep.subr.bf16.mxu1 %v999_v1  ;;  %v594_v24 = vmax.f32 %v546_v16, 0.0  ;;  %v621_v0 = vpop.permute.xlu0 %620 }
 0x108   : > { %v541_v23 = vadd.f32 %v540_v21, %v334_v52  ;;  %v592_v27 = vmax.f32 %v538_v18, 0.0 }
 0x109   : > { %v595_v25 = vmax.f32 %v549_v20, 0.0 }
 0x10a   : > { %v593_v28 = vmax.f32 %v541_v23, 0.0  ;;  %648 = vmatpush1.bf16.msra.mxu1 %v607_v12 }
 0x10b   : > { %v609_v29 = vpack.c.bf16 %v595_v25, %v594_v24  ;;  %649 = vmatprep.subr.bf16.mxu1 %v999_v1 }
 0x10c   : > { %v608_v30 = vpack.c.bf16 %v593_v28, %v592_v27  ;;  %v862_v31 = vpop.f32.mrb[12].mxu0 }
 0x10d   : > { %v562_v32 = vadd.f32 %v862_v31, %v359_v22  ;;  %v553_v33 = vpop.f32.mrb[13].mxu0 }
 0x10e   : > { %v554_v35 = vadd.f32 %v553_v33, %v349_v9  ;;  %v863_v36 = vpop.f32.mrb[14].mxu0  ;;  %650 = vmatpush1.bf16.msra.mxu1 %v608_v30 }
 0x10f   : > { %v565_v37 = vadd.f32 %v863_v36, %v364_v26  ;;  %v556_v38 = vpop.f32.mrb[15].mxu0  ;;  %651 = vmatprep.subr.bf16.mxu1 %v999_v1  ;;  %v598_v41 = vmax.f32 %v562_v32, 0.0 }
 0x110   : > { %v557_v40 = vadd.f32 %v556_v38, %v354_v13  ;;  %v596_v43 = vmax.f32 %v554_v35, 0.0 }
 0x111   : > { %v599_v42 = vmax.f32 %v565_v37, 0.0 }
 0x112   : > { %v597_v44 = vmax.f32 %v557_v40, 0.0  ;;  %652 = vmatpush1.bf16.msra.mxu1 %v609_v29 }
 0x113   : > { %v611_v45 = vpack.c.bf16 %v599_v42, %v598_v41  ;;  %653 = vmatprep.subr.bf16.mxu1 %v999_v1 }
 0x114   : > { %v610_v47 = vpack.c.bf16 %v597_v44, %v596_v43  ;;  %v866_v48 = vpop.f32.mrb[16].mxu0 }
 0x115   : > { %v578_v49 = vadd.f32 %v866_v48, %v379_v46  ;;  %v569_v50 = vpop.f32.mrb[17].mxu0 }
 0x116   : > { %v570_v52 = vadd.f32 %v569_v50, %v369_v34  ;;  %v867_v53 = vpop.f32.mrb[18].mxu0  ;;  %654 = vmatpush1.bf16.msra.mxu1 %v610_v47 }
 0x117   : > { %v581_v54 = vadd.f32 %v867_v53, %v384_v51  ;;  %v572_v55 = vpop.f32.mrb[19].mxu0  ;;  %655 = vmatprep.subr.bf16.mxu1 %v999_v1  ;;  %v602_v57 = vmax.f32 %v578_v49, 0.0 }
 0x118   : > { %v573_v56 = vadd.f32 %v572_v55, %v374_v39  ;;  %v600_v59 = vmax.f32 %v570_v52, 0.0 }
 0x119   : > { %v603_v58 = vmax.f32 %v581_v54, 0.0 }
 0x11a   : > { %v601_v60 = vmax.f32 %v573_v56, 0.0  ;;  %656 = vmatpush1.bf16.msra.mxu1 %v611_v45 }
 0x11b   : > { %v613_v61 = vpack.c.bf16 %v603_v58, %v602_v57  ;;  %657 = vmatprep.subr.bf16.mxu1 %v999_v1 }
 0x11c   : > { %v612_v62 = vpack.c.bf16 %v601_v60, %v600_v59 }
 0x11e   : > { %658 = vmatpush1.bf16.msra.mxu1 %v612_v62 }
 0x11f   : > { %659 = vmatprep.subr.bf16.mxu1 %v999_v1 }
 0x122   : > { %660 = vmatpush1.bf16.msra.mxu1 %v613_v61 }
 0x125   : > { %674 = vmatmul.mubr.bf16.vlgmr.msra.gmra.mrb[0].mxu1 %v940_v63 }
 0x1f7   : > { %690 = sbr.rel (!%p1076_p5) target bundleno = 518 (0x206), region = 44 }
 0x1f8   : > { %v675_v2 = vpop.f32.mrb[0].mxu1 }
 0x1f9   : > { %v676_v3 = vadd.f32 %v675_v2, %v621_v0  ;;  %v677_v4 = vpop.f32.mrb[1].mxu1 }
 0x1fa   : > { %v678_v6 = vpop.f32.mrb[2].mxu1 }
 0x1fb   : > { %682 = vst [vmem:[%s235_s17] sm:$0xff] %v676_v3  ;;  %v679_v7 = vadd.f32 %v678_v6, %v626_v5  ;;  %v680_v8 = vpop.f32.mrb[3].mxu1 }
 0x1fd   : > { %683 = vst [vmem:[%s235_s17 + $0x8] sm:$0x3] %v679_v7 }
 0x202   : > { %v724_v1 = vld [vmem:[%s235_s17] sm:$0xff] }
 0x203   : > { %725 = vst [vmem:[%s694_s7] sm:$0xff] %v724_v1 }
 0x204   : > { %v726_v9 = vld [vmem:[%s235_s17 + $0x8] sm:$0xff] }
 0x205   : > { %727 = vst [vmem:[%s694_s7 + $0x18] sm:$0xff] %v726_v9 }
 0x206 PF: > { %s15_s24 = sadd.s32 1, %s997_s24   ;;  %s1256_s18 = smov %s977_s19 }
 0x207   : > { %p12_p11 = scmp.ge.s32.totalorder %s15_s24, 8   ;;  %s1257_s19 = smov %s1087_s8 }
 0x208   : > { %s1258_s20 = smov %s989_s22  ;;  %s1259_s21 = smov %s993_s23 }
 0x209   : > { %s1260_s22 = smov %s1263_s25  ;;  %s1261_s23 = smov %s1267_s26 }
 0x20a   :  { %14 = sbr.rel (!%p12_p11) target bundleno = 4 (0x4), region = 108 }

</bundles_post_ra>
